<compile_context>
chip_gen: v7x
topology: tpu7x:2x2x1
jax: 0.10.0
libtpu: 0.0.40
codegen_flags: <defaults>
</compile_context>

<pallas_src>
import jax
import jax.numpy as jnp
from jax.experimental import pallas as pl
from jax.experimental.pallas import tpu as pltpu

_LANE = 128


def _round_up(a, b):
    return (a + b - 1) // b * b


def _odefunc_kernel(x_ref, w1_ref, b1_ref, w2_ref, b2_ref, out_ref):
    # x_ref:  (2, TN)   w1_ref: (Hp, 2)  b1_ref: (Hp, 1)
    # w2_ref: (2, Hp)   b2_ref: (2, 1)   out_ref: (2, TN)
    x0 = x_ref[0:1, :]                      # (1, TN)
    x1 = x_ref[1:2, :]                      # (1, TN)

    # Layer 1 on the VPU: K=2 contraction as two broadcast FMAs; tanh on EUP.
    h = jnp.tanh(w1_ref[:, 0:1] * x0 + w1_ref[:, 1:2] * x1 + b1_ref[...])  # (Hp, TN)

    # Layer 2 on the MXU: lane-dense output (2, TN).
    out = jnp.dot(w2_ref[...], h, preferred_element_type=jnp.float32) + b2_ref[...]
    out_ref[...] = out.astype(out_ref.dtype)


def odefunc_forward(t, x, params, *, tile_n=512):
    """Pallas equivalent of ODEFunc.forward(t, x).

    t is unused (as in the reference). x has shape (2, N), float32.
    Returns array of shape (2, N).
    """
    del t  # unused, matching the PyTorch module
    w1, b1, w2, b2 = params        # w1: (50,2)  b1: (50,)  w2: (2,50)  b2: (2,)
    H = w1.shape[0]
    Hp = _round_up(H, 8)           # 50 -> 56, sublane-aligned hidden dim
    N = x.shape[1]
    dt = x.dtype

    # Pad/reshape the tiny weights once (feature-major, hidden on sublanes).
    w1p = jnp.zeros((Hp, 2), dt).at[:H, :].set(w1.astype(dt))
    b1p = jnp.zeros((Hp, 1), dt).at[:H, 0].set(b1.astype(dt))
    w2p = jnp.zeros((2, Hp), dt).at[:, :H].set(w2.astype(dt))
    b2p = b2.reshape(2, 1).astype(dt)

    # Tile the batch dim on lanes; pad N so every block is full-width.
    tn = min(tile_n, _round_up(N, _LANE))
    n_pad = _round_up(N, tn)
    xp = x if n_pad == N else jnp.pad(x, ((0, 0), (0, n_pad - N)))
    grid = (n_pad // tn,)

    out = pl.pallas_call(
        _odefunc_kernel,
        out_shape=jax.ShapeDtypeStruct((2, n_pad), dt),
        grid=grid,
        in_specs=[
            pl.BlockSpec((2, tn), lambda i: (0, i)),     # x: tiled over N
            pl.BlockSpec((Hp, 2), lambda i: (0, 0)),     # W1 (resident)
            pl.BlockSpec((Hp, 1), lambda i: (0, 0)),     # b1 (resident)
            pl.BlockSpec((2, Hp), lambda i: (0, 0)),     # W2 (resident)
            pl.BlockSpec((2, 1), lambda i: (0, 0)),      # b2 (resident)
        ],
        out_specs=pl.BlockSpec((2, tn), lambda i: (0, i)),
        compiler_params=pltpu.CompilerParams(
            dimension_semantics=("parallel",)),
    )(xp, w1p, b1p, w2p, b2p)

    return out[:, :N]


def init_params(key, hidden=50):
    # Matches: nn.init.normal_(weight, mean=0, std=0.1); bias = 0
    k1, k2 = jax.random.split(key)
    w1 = 0.1 * jax.random.normal(k1, (hidden, 2), dtype=jnp.float32)   # Linear(2,50).weight
    b1 = jnp.zeros((hidden,), dtype=jnp.float32)                       # Linear(2,50).bias
    w2 = 0.1 * jax.random.normal(k2, (2, hidden), dtype=jnp.float32)   # Linear(50,2).weight
    b2 = jnp.zeros((2,), dtype=jnp.float32)                            # Linear(50,2).bias
    return (w1, b1, w2, b2)


def _reference(t, x, params):
    # Pure-JAX reference: self.net(x.t()).t()
    w1, b1, w2, b2 = params
    h = jnp.tanh(x.T @ w1.T + b1)
    return (h @ w2.T + b2).T


if __name__ == "__main__":
    key = jax.random.PRNGKey(0)
    kp, kx = jax.random.split(key)
    params = init_params(kp)

    N = 256                    # number of ODE states / batch points (small)
    x = jax.random.normal(kx, (2, N), dtype=jnp.float32)  # matches x.t() usage
    t = jnp.float32(0.0)       # unused, kept for signature parity

    out = odefunc_forward(t, x, params)
    out = jax.block_until_ready(out)

    ref = _reference(t, x, params)
    assert out.shape == (2, N)
    assert jnp.allclose(out, ref, atol=1e-5, rtol=1e-5)

    # Also exercise the padding path (N not a multiple of the lane tile).
    x_small = jax.random.normal(jax.random.PRNGKey(1), (2, 8), dtype=jnp.float32)
    out_small = jax.block_until_ready(odefunc_forward(t, x_small, params))
    assert jnp.allclose(out_small, _reference(t, x_small, params), atol=1e-5, rtol=1e-5)

    print("KERNEL_OK")
</pallas_src>

<mosaic_0001>
module attributes {stable_mosaic.version = 11 : i64} {
  func.func @_odefunc_kernel(%arg0: i32, %arg1: memref<2x256xf32, #tpu.memory_space<vmem>>, %arg2: memref<56x2xf32, #tpu.memory_space<vmem>>, %arg3: memref<56x1xf32, #tpu.memory_space<vmem>>, %arg4: memref<2x56xf32, #tpu.memory_space<vmem>>, %arg5: memref<2x1xf32, #tpu.memory_space<vmem>>, %arg6: memref<2x256xf32, #tpu.memory_space<vmem>>) attributes {dimension_semantics = [#tpu.dimension_semantics<parallel>], iteration_bounds = array<i64: 1>, scalar_prefetch = 0 : i64, scratch_operands = 0 : i64, tpu.core_type = #tpu.core_type<tc>, window_params = [{transform_indices = @transform_0, window_bounds = array<i64: 2, 256>}, {pipeline_mode = #tpu.pipeline_mode<synchronous>, transform_indices = @transform_1, window_bounds = array<i64: 56, 2>}, {pipeline_mode = #tpu.pipeline_mode<synchronous>, transform_indices = @transform_2, window_bounds = array<i64: 56, 1>}, {pipeline_mode = #tpu.pipeline_mode<synchronous>, transform_indices = @transform_3, window_bounds = array<i64: 2, 56>}, {pipeline_mode = #tpu.pipeline_mode<synchronous>, transform_indices = @transform_4, window_bounds = array<i64: 2, 1>}, {transform_indices = @transform_5, window_bounds = array<i64: 2, 256>}]} {
    %c0 = arith.constant 0 : index
    %c0_0 = arith.constant 0 : index
    %0 = vector.load %arg1[%c0, %c0_0] : memref<2x256xf32, #tpu.memory_space<vmem>>, vector<1x256xf32>
    %c1 = arith.constant 1 : index
    %c0_1 = arith.constant 0 : index
    %1 = vector.load %arg1[%c1, %c0_1] : memref<2x256xf32, #tpu.memory_space<vmem>>, vector<1x256xf32>
    %c0_2 = arith.constant 0 : index
    %c0_3 = arith.constant 0 : index
    %2 = vector.load %arg2[%c0_2, %c0_3] : memref<56x2xf32, #tpu.memory_space<vmem>>, vector<56x1xf32>
    %3 = vector.broadcast %2 : vector<56x1xf32> to vector<56x256xf32>
    %4 = vector.broadcast %0 : vector<1x256xf32> to vector<56x256xf32>
    %5 = arith.mulf %3, %4 : vector<56x256xf32>
    %c0_4 = arith.constant 0 : index
    %c1_5 = arith.constant 1 : index
    %6 = vector.load %arg2[%c0_4, %c1_5] : memref<56x2xf32, #tpu.memory_space<vmem>>, vector<56x1xf32>
    %7 = vector.broadcast %6 : vector<56x1xf32> to vector<56x256xf32>
    %8 = vector.broadcast %1 : vector<1x256xf32> to vector<56x256xf32>
    %9 = arith.mulf %7, %8 : vector<56x256xf32>
    %10 = arith.addf %5, %9 : vector<56x256xf32>
    %c0_6 = arith.constant 0 : index
    %c0_7 = arith.constant 0 : index
    %11 = vector.load %arg3[%c0_6, %c0_7] : memref<56x1xf32, #tpu.memory_space<vmem>>, vector<56x1xf32>
    %12 = vector.broadcast %11 : vector<56x1xf32> to vector<56x256xf32>
    %13 = arith.addf %10, %12 : vector<56x256xf32>
    %14 = math.tanh %13 : vector<56x256xf32>
    %c0_8 = arith.constant 0 : index
    %c0_9 = arith.constant 0 : index
    %15 = vector.load %arg4[%c0_8, %c0_9] : memref<2x56xf32, #tpu.memory_space<vmem>>, vector<2x56xf32>
    %cst = arith.constant dense<0.000000e+00> : vector<2x256xf32>
    %16 = tpu.matmul %15, %14, %cst {dimension_numbers = #tpu.dot_dimension_numbers<[1], [0], [0], [1], [0, 0, 1, 1], [], []>} : vector<2x56xf32>, vector<56x256xf32>, vector<2x256xf32> -> vector<2x256xf32>
    %c0_10 = arith.constant 0 : index
    %c0_11 = arith.constant 0 : index
    %17 = vector.load %arg5[%c0_10, %c0_11] : memref<2x1xf32, #tpu.memory_space<vmem>>, vector<2x1xf32>
    %18 = vector.broadcast %17 : vector<2x1xf32> to vector<2x256xf32>
    %19 = arith.addf %16, %18 : vector<2x256xf32>
    %c0_12 = arith.constant 0 : index
    %c0_13 = arith.constant 0 : index
    %20 = vector.load %arg6[%c0_12, %c0_13] : memref<2x256xf32, #tpu.memory_space<vmem>>, vector<2x256xf32>
    tpu.vector_store %arg6[%c0_12, %c0_13], %19 {strides = array<i32>} : memref<2x256xf32, #tpu.memory_space<vmem>>, vector<2x256xf32>,
    return
  }
  func.func @transform_0(%arg0: i32) -> (i32, i32) {
    %c0_i32 = arith.constant 0 : i32
    %c0_i32_0 = arith.constant 0 : i32
    return %c0_i32, %arg0 : i32, i32
  }
  func.func @transform_1(%arg0: i32) -> (i32, i32) {
    %c0_i32 = arith.constant 0 : i32
    %c0_i32_0 = arith.constant 0 : i32
    %c0_i32_1 = arith.constant 0 : i32
    return %c0_i32, %c0_i32_0 : i32, i32
  }
  func.func @transform_2(%arg0: i32) -> (i32, i32) {
    %c0_i32 = arith.constant 0 : i32
    %c0_i32_0 = arith.constant 0 : i32
    %c0_i32_1 = arith.constant 0 : i32
    return %c0_i32, %c0_i32_0 : i32, i32
  }
  func.func @transform_3(%arg0: i32) -> (i32, i32) {
    %c0_i32 = arith.constant 0 : i32
    %c0_i32_0 = arith.constant 0 : i32
    %c0_i32_1 = arith.constant 0 : i32
    return %c0_i32, %c0_i32_0 : i32, i32
  }
  func.func @transform_4(%arg0: i32) -> (i32, i32) {
    %c0_i32 = arith.constant 0 : i32
    %c0_i32_0 = arith.constant 0 : i32
    %c0_i32_1 = arith.constant 0 : i32
    return %c0_i32, %c0_i32_0 : i32, i32
  }
  func.func @transform_5(%arg0: i32) -> (i32, i32) {
    %c0_i32 = arith.constant 0 : i32
    %c0_i32_0 = arith.constant 0 : i32
    return %c0_i32, %arg0 : i32, i32
  }
}

</mosaic_0001>

<bundles_post_ra>
// kernel: tpu_custom_call.1
= control target key start
LH: loop header
LB: loop body
LE: loop exit
PB: predicated region body
PF: predicated region fallthrough
CT: control target
= control target key end

     0   :  { %v417_v2 = vmov 1   ;;  %s557_s0 = inlined_call_operand.vmem [shape: f32[2,256], index: 0, kind: input, shape index: {}]   ;;  %s558_s1 = inlined_call_operand.vmem [shape: f32[56,2], index: 1, kind: input, shape index: {}]   ;;  %s559_s2 = inlined_call_operand.vmem [shape: f32[56,1], index: 2, kind: input, shape index: {}]   ;;  %s560_s3 = inlined_call_operand.vmem [shape: f32[2,56], index: 3, kind: input, shape index: {}]   ;;  %s561_s4 = inlined_call_operand.vmem [shape: f32[2,1], index: 4, kind: input, shape index: {}]   ;;  %s562_s5 = inlined_call_operand.hbm [shape: f32[2,256], index: 5, kind: output, shape index: {}]  }
   0x1   :  { %v26_v0 = vld [vmem:[%s558_s1 + $0x10] sm:$0xff]  ;;  %v24_v1 = vld [vmem:[%s558_s1] sm:$0xff]  ;;  %357 = vset.pattern.permute.xlu0 %v417_v2  ;;  %355 = vset.pattern.permute.xlu1 %v417_v2  ;;  %v25_v4 = vld [vmem:[%s558_s1 + $0x8] sm:$0xff] }
   0x2   :  { %100 = vperm.xlu0 %357, %v26_v0   ;;  %92 = vperm.xlu1 %355, %v24_v1   ;;  %v28_v3 = vld [vmem:[%s558_s1 + $0x20] sm:$0xff] }
   0x3   :  { %10 = vsyncpa [#allocation3], 0  ;;  %v27_v5 = vld [vmem:[%s558_s1 + $0x18] sm:$0xff]  ;;  %v418_v6 = vmov 0   ;;  %v158_v7 = vld [vmem:[%s559_s2] sm:$0xff]  ;;  %v419_v16 = vmov 0.0   ;;  %v67_v18 = vlaneseq }
   0x4   :  { %v159_v8 = vld [vmem:[%s559_s2 + $0x8] sm:$0xff]  ;;  %v161_v9 = vld [vmem:[%s559_s2 + $0x18] sm:$0xff]  ;;  %v30_v11 = vld [vmem:[%s558_s1 + $0x30] sm:$0xff]  ;;  %303 = vmatprep.mubr.f32.mxu0 %v419_v16  ;;  %vm235_vm0 = vcmask 457728   ;;  %s420_s25 = smov [#allocation2]  }
   0x5   :  { %v29_v10 = vld [vmem:[%s558_s1 + $0x28] sm:$0xff]  ;;  %v164_v12 = vld [vmem:[%s559_s2 + $0x30] sm:$0xff]  ;;  %v162_v14 = vld [vmem:[%s559_s2 + $0x20] sm:$0xff]  ;;  %v68_v21 = vshrl.u32 %v67_v18, 7  ;;  %s328_s26 = sshll.u32 %s420_s25, 4  ;;  %s329_s26 = int_to_ptr.vmem [resolvable:$true] %s328_s26 }
   0x6   :  { %108 = vperm.xlu0 %357, %v28_v3   ;;  %96 = vperm.xlu1 %355, %v25_v4   ;;  %v160_v13 = vld [vmem:[%s559_s2 + $0x10] sm:$0xff]  ;;  %v163_v15 = vld [vmem:[%s559_s2 + $0x28] sm:$0xff]  ;;  %v229_v17 = vld [vmem:[%s561_s4] sm:$0x3]  ;;  %s393_s27 = scalar_lea.vmem %s329_s26, 64  ;;  %p398_p1 = scmp.lt.s32.totalorder %s329_s26, %s329_s26 }
   0x7   :  { %v21_v24 = vld [vmem:[%s557_s0] ss:$2 sm:$0x3]  ;;  %v69_v25 = vsub.s32 0, %v68_v21  ;;  %v73_v26 = vsub.s32 1, %v68_v21  ;;  %p394_p0 = scmp.ne.s32.totalorder %s329_s26, %s393_s27  ;;  %p399_p2 = scmp.lt.s32.totalorder %s393_s27, %s393_s27 }
   0x8   :  { %v336_v27 = vld [vmem:[%s557_s0 + $0x1] ss:$2 sm:$0x3] }
   0x9   :  { %v504_v30 = vrot.slane %v21_v24, %v69_v25  ;;  %v506_v31 = vrot.slane %v21_v24, %v73_v26  ;;  %v508_v32 = vrot.slane %v336_v27, %v69_v25  ;;  %v510_v33 = vrot.slane %v336_v27, %v73_v26  ;;  %p400_p3 = por %p399_p2, %p398_p1 }
   0xa   :  { %360 = vset.pattern.permute.xlu0 %v418_v6  ;;  %356 = vset.pattern.permute.xlu1 %v418_v6 }
   0xb   :  { %33 = vperm.xlu0 %360, %v24_v1   ;;  %48 = vperm.xlu1 %356, %v27_v5   ;;  %p401_p4 = pnand %p400_p3, %p394_p0 }
   0xf   :  { %38 = vperm.xlu0 %360, %v25_v4   ;;  %358 = vset.pattern.permute.xlu1 %v417_v2 }
  0x10   :  { %104 = vperm.xlu1 %358, %v27_v5  }
  0x13   :  { %43 = vperm.xlu0 %360, %v26_v0  }
  0x14   :  { %359 = vset.pattern.permute.xlu1 %v418_v6 }
  0x15   :  { %167 = vperm.xlu1 %359, %v158_v7  }
  0x17   :  { %172 = vperm.xlu0 %360, %v159_v8  }
  0x19   :  { %53 = vperm.xlu1 %359, %v28_v3  }
  0x1b   :  { %182 = vperm.xlu0 %360, %v161_v9  }
  0x1d   :  { %58 = vperm.xlu1 %359, %v29_v10  }
  0x1f   :  { %63 = vperm.xlu0 %360, %v30_v11  }
  0x21   :  { %361 = vset.pattern.permute.xlu1 %v417_v2 }
  0x22   :  { %112 = vperm.xlu1 %361, %v29_v10  }
  0x23   :  { %197 = vperm.xlu0 %360, %v164_v12  }
  0x26   :  { %362 = vset.pattern.permute.xlu1 %v418_v6 }
  0x27   :  { %177 = vperm.xlu1 %362, %v160_v13  }
  0x2b   :  { %187 = vperm.xlu1 %362, %v162_v14  }
  0x2f   :  { %192 = vperm.xlu1 %362, %v163_v15  }
  0x33   :  { %363 = vset.pattern.permute.xlu1 %v417_v2 }
  0x34   :  { %116 = vperm.xlu1 %363, %v30_v11  }
  0x38   :  { %364 = vset.pattern.permute.xlu1 %v418_v6 }
  0x39   :  { %232 = vperm.xlu1 %364, %v229_v17  }
  0x81   :  { %v93_v19 = vpop.permute.xlu1 %92  ;;  %v101_v20 = vpop.permute.xlu0 %100 }
  0x82   :  { %v130_v38 = vmul.f32 %v508_v32, %v93_v19  ;;  %v131_v39 = vmul.f32 %v510_v33, %v93_v19  ;;  %v134_v60 = vmul.f32 %v508_v32, %v101_v20  ;;  %v135_v0 = vmul.f32 %v510_v33, %v101_v20 }
  0x85   :  { %v97_v22 = vpop.permute.xlu1 %96  ;;  %v496_v23 = vpop.permute.xlu0 %108 }
  0x86   :  { %v132_v43 = vmul.f32 %v508_v32, %v97_v22  ;;  %v133_v44 = vmul.f32 %v510_v33, %v97_v22  ;;  %v138_v18 = vmul.f32 %v508_v32, %v496_v23  ;;  %v139_v21 = vmul.f32 %v510_v33, %v496_v23 }
  0x8a   :  { %v34_v28 = vpop.permute.xlu0 %33  ;;  %v49_v29 = vpop.permute.xlu1 %48 }
  0x8b   :  { %v77_v35 = vmul.f32 %v504_v30, %v34_v28  ;;  %v78_v36 = vmul.f32 %v506_v31, %v34_v28  ;;  %v83_v59 = vmul.f32 %v504_v30, %v49_v29  ;;  %v84_v61 = vmul.f32 %v506_v31, %v49_v29 }
  0x8d   :  { %v144_v45 = vadd.f32 %v130_v38, %v77_v35  ;;  %v145_v46 = vadd.f32 %v131_v39, %v78_v36 }
  0x8e   :  { %v39_v34 = vpop.permute.xlu0 %38 }
  0x8f   :  { %v105_v37 = vpop.permute.xlu1 %104  ;;  %v79_v40 = vmul.f32 %v504_v30, %v39_v34  ;;  %v80_v41 = vmul.f32 %v506_v31, %v39_v34 }
  0x90   :  { %v136_v57 = vmul.f32 %v508_v32, %v105_v37  ;;  %v137_v58 = vmul.f32 %v510_v33, %v105_v37 }
  0x91   :  { %v146_v50 = vadd.f32 %v132_v43, %v79_v40  ;;  %v147_v51 = vadd.f32 %v133_v44, %v80_v41 }
  0x92   :  { %v44_v42 = vpop.permute.xlu0 %43  ;;  %v150_v3 = vadd.f32 %v136_v57, %v83_v59  ;;  %v151_v6 = vadd.f32 %v137_v58, %v84_v61  ;;  %v228_v61 = vld [vmem:[%s560_s3] sm:$0x3] }
  0x93   :  { %v81_v1 = vmul.f32 %v504_v30, %v44_v42  ;;  %v82_v2 = vmul.f32 %v506_v31, %v44_v42 }
  0x94   :  { %v168_v47 = vpop.permute.xlu1 %167 }
  0x95   :  { %v200_v48 = vadd.f32 %v168_v47, %v144_v45  ;;  %v201_v49 = vadd.f32 %v168_v47, %v145_v46  ;;  %v148_v13 = vadd.f32 %v134_v60, %v81_v1  ;;  %v149_v14 = vadd.f32 %v135_v0, %v82_v2 }
  0x96   :  { %v173_v52 = vpop.permute.xlu0 %172 }
  0x97   :  { %365 = vtanh.f32 %v200_v48  ;;  %v202_v53 = vadd.f32 %v173_v52, %v146_v50  ;;  %v203_v54 = vadd.f32 %v173_v52, %v147_v51 }
  0x98   :  { %367 = vtanh.f32 %v201_v49  ;;  %v54_v55 = vpop.permute.xlu1 %53 }
  0x99   :  { %369 = vtanh.f32 %v202_v53  ;;  %v85_v12 = vmul.f32 %v504_v30, %v54_v55  ;;  %v86_v16 = vmul.f32 %v506_v31, %v54_v55 }
  0x9a   :  { %371 = vtanh.f32 %v203_v54  ;;  %v183_v62 = vpop.permute.xlu0 %182 }
  0x9b   :  { %v206_v8 = vadd.f32 %v183_v62, %v150_v3  ;;  %v207_v10 = vadd.f32 %v183_v62, %v151_v6  ;;  %v152_v25 = vadd.f32 %v138_v18, %v85_v12  ;;  %v153_v27 = vadd.f32 %v139_v21, %v86_v16 }
  0x9c   :  { %v59_v56 = vpop.permute.xlu1 %58 }
  0x9d   :  { %373 = vtanh.f32 %v206_v8  ;;  %v87_v28 = vmul.f32 %v504_v30, %v59_v56  ;;  %v88_v29 = vmul.f32 %v506_v31, %v59_v56 }
  0x9e   :  { %375 = vtanh.f32 %v207_v10  ;;  %v64_v40 = vpop.permute.xlu0 %63 }
  0x9f   :  { %v89_v44 = vmul.f32 %v504_v30, %v64_v40  ;;  %v90_v47 = vmul.f32 %v506_v31, %v64_v40 }
  0xa1   :  { %v366_v63 = vpop.eup %365  ;;  %v113_v4 = vpop.permute.xlu1 %112 }
  0xa2   :  { %v368_v5 = vpop.eup %367  ;;  %v140_v22 = vmul.f32 %v508_v32, %v113_v4  ;;  %v141_v24 = vmul.f32 %v510_v33, %v113_v4  ;;  %v198_v54 = vpop.permute.xlu0 %197 }
  0xa3   :  { %v370_v7 = vpop.eup %369 }
  0xa4   :  { %v372_v9 = vpop.eup %371  ;;  %v341_v11 = vpack.c.bf16 %v370_v7, %v366_v63  ;;  %v154_v36 = vadd.f32 %v140_v22, %v87_v28  ;;  %v155_v37 = vadd.f32 %v141_v24, %v88_v29 }
  0xa5   :  { %v339_v15 = vpack.c.bf16 %v372_v9, %v368_v5 }
  0xa6   :  { %v178_v17 = vpop.permute.xlu1 %177 }
  0xa7   :  { %v204_v19 = vadd.f32 %v178_v17, %v148_v13  ;;  %v205_v20 = vadd.f32 %v178_v17, %v149_v14  ;;  %340 = vmatprep.subr.bf16.mxu0 %v339_v15  ;;  %v374_v41 = vpop.eup %373 }
  0xa8   :  { %342 = vmatpush1.bf16.msra.mxu0 %v341_v11  ;;  %v376_v42 = vpop.eup %375 }
  0xa9   :  { %377 = vtanh.f32 %v204_v19 }
  0xaa   :  { %379 = vtanh.f32 %v205_v20  ;;  %v188_v26 = vpop.permute.xlu1 %187 }
  0xab   :  { %v208_v34 = vadd.f32 %v188_v26, %v152_v25  ;;  %v209_v35 = vadd.f32 %v188_v26, %v153_v27 }
  0xad   :  { %381 = vtanh.f32 %v208_v34 }
  0xae   :  { %v193_v23 = vpop.permute.xlu1 %192  ;;  %383 = vtanh.f32 %v209_v35 }
  0xaf   :  { %v210_v38 = vadd.f32 %v193_v23, %v154_v36  ;;  %v211_v39 = vadd.f32 %v193_v23, %v155_v37 }
  0xb1   :  { %385 = vtanh.f32 %v210_v38 }
  0xb2   :  { %387 = vtanh.f32 %v211_v39 }
  0xb3   :  { %v378_v43 = vpop.eup %377  ;;  %v117_v45 = vpop.permute.xlu1 %116 }
  0xb4   :  { %v380_v46 = vpop.eup %379  ;;  %v142_v48 = vmul.f32 %v508_v32, %v117_v45  ;;  %v143_v49 = vmul.f32 %v510_v33, %v117_v45  ;;  %v345_v50 = vpack.c.bf16 %v374_v41, %v378_v43 }
  0xb5   :  { %v343_v51 = vpack.c.bf16 %v376_v42, %v380_v46 }
  0xb6   :  { %v156_v52 = vadd.f32 %v142_v48, %v89_v44  ;;  %v157_v53 = vadd.f32 %v143_v49, %v90_v47 }
  0xb7   :  { %344 = vmatprep.subr.bf16.mxu0 %v343_v51  ;;  %v382_v57 = vpop.eup %381 }
  0xb8   :  { %v212_v55 = vadd.f32 %v198_v54, %v156_v52  ;;  %v213_v56 = vadd.f32 %v198_v54, %v157_v53  ;;  %346 = vmatpush1.bf16.msra.mxu0 %v345_v50  ;;  %v384_v58 = vpop.eup %383  ;;  %v233_v62 = vpop.permute.xlu1 %232 }
  0xba   :  { %389 = vtanh.f32 %v212_v55 }
  0xbb   :  { %v386_v30 = vpop.eup %385  ;;  %391 = vtanh.f32 %v213_v56 }
  0xbc   :  { %v388_v59 = vpop.eup %387  ;;  %v349_v31 = vpack.c.bf16 %v386_v30, %v382_v57 }
  0xbd   :  { %v347_v60 = vpack.c.bf16 %v388_v59, %v384_v58 }
  0xbf   :  { %348 = vmatprep.subr.bf16.mxu0 %v347_v60 }
  0xc0   :  { %350 = vmatpush1.bf16.msra.mxu0 %v349_v31 }
  0xc4   :  { %v390_v32 = vpop.eup %389 }
  0xc5   :  { %v392_v33 = vpop.eup %391 }
  0xc6   :  { %251 = vmatprep.subr.mxu0 %v392_v33 }
  0xc7   :  { %252 = vmatpush1.msra.mxu0 %v390_v32 }
  0xc8   :  { %337 = vmatmul.mubr.msk.f32.vlgmr.msra.gmra.mrb[0].mxu0 %vm235_vm0, %v228_v61 }
 0x19b   :  { %v305_v63 = vpop.f32.mrb[0].mxu0 }
 0x19c   :  { %v306_v0 = vadd.f32 %v305_v63, %v233_v62  ;;  %v307_v1 = vpop.f32.mrb[1].mxu0 }
 0x19d   :  { %v308_v2 = vadd.f32 %v307_v1, %v233_v62 }
 0x19f   :  { %v312_v3 = vcombine.low %v306_v0, %v308_v2 }
 0x1a1   :  { %338 = vst.sshfl [vmem:[#allocation2] sm:$0x33 pattern:$0x76325410] %v312_v3 }
 0x1a2   :  { %404 = shalt.err (!%p401_p4)
}
 0x1a3   :  { %s405_s29 = scalar_lea.hbm %s562_s5, 64 }
 0x1a4   :  { %p406_p5 = scmp.ne.s32.totalorder %s562_s5, %s405_s29  ;;  %p409_p6 = scmp.lt.u32.totalorder %s405_s29, %s562_s5 }
 0x1a6   :  { %p411_p7 = pnand %p409_p6, %p406_p5 }
 0x1a8   :  { %414 = shalt.err (!%p411_p7)
}
 0x1a9   :  { %331 = dma.vmem_to_hbm [thread:$0]  %s329_s26, 64, %s562_s5, [#allocation3]  }
 0x1aa   :  { %415 = dma.done.wait [#allocation3], 64  }
 0x1ab   :  { %416 = vsyncadd [#allocation3], 4294967232 }
 0x1ac   :  { %335 = vsyncpa [#allocation3], 1 }

</bundles_post_ra>
